<compile_context>
chip_gen: v7x
topology: tpu7x:2x2x1
jax: 0.10.0
libtpu: 0.0.40
codegen_flags: <defaults>
</compile_context>

<pallas_src>
import math
import functools

import jax
import jax.numpy as jnp
from jax.experimental import pallas as pl
from jax.experimental.pallas import tpu as pltpu


def _pos_enc_kernel(nl_ref, out_ref, *, dim, count, fold):
    # nl_ref  : (TB, fold)        f32  -- `fold` original batch rows per lane-row
    # out_ref : (TB, fold * dim)  out  -- lane-dense encoding block
    tb = nl_ref.shape[0]
    w = fold * dim

    # Per-column phase pattern, built from a lane iota (no constant input DMA,
    # no exp left in the wrapper graph). Cost: a handful of VPU ops + one
    # (1, w)-wide exp per grid step.
    col = jax.lax.broadcasted_iota(jnp.int32, (1, w), 1)
    p = col % dim                                              # position inside one encoding row
    q = jnp.where(p < count, p, p - count).astype(jnp.float32)  # frequency index
    freq = jnp.exp(q * jnp.float32(-math.log(10000.0) / count))  # (1, w)
    off = jnp.where(p < count, jnp.float32(0.0), jnp.float32(math.pi / 2.0))  # sin | cos halves

    nl = nl_ref[...]                                           # (TB, fold)
    # Expand each folded noise value across its dim-wide column group with
    # lane selects (fold is a small static int: 1, 2, or 4 typically).
    nl_wide = jnp.broadcast_to(nl[:, 0:1], (tb, w))
    for j in range(1, fold):
        nl_wide = jnp.where(col >= j * dim, nl[:, j:j + 1], nl_wide)

    # cos(x) == sin(x + pi/2): one lane-dense transcendental over the full width.
    out_ref[...] = jnp.sin(nl_wide * freq + off).astype(out_ref.dtype)


def positional_encoding(noise_level: jax.Array, dim: int, block_b: int = 1024) -> jax.Array:
    """noise_level: (B,) float array. Returns (B, dim) encoding (noise_level dtype)."""
    assert dim % 2 == 0, "dim must be even"
    count = dim // 2
    (B,) = noise_level.shape
    out_dtype = (noise_level.dtype
                 if jnp.issubdtype(noise_level.dtype, jnp.floating) else jnp.float32)

    # Lane folding: pack k = 128 // dim batch rows per lane row so the stored
    # last dim is a multiple of 128 (unmasked vst). Only when it divides cleanly;
    # otherwise fall back to the plain layout (still correct, partially masked).
    fold = 1
    if dim < 128 and 128 % dim == 0 and B % (128 // dim) == 0:
        fold = 128 // dim
    w = fold * dim
    bf = B // fold

    nl = noise_level.astype(jnp.float32).reshape(bf, fold)

    # Batch tile: large (amortize ~0.35us/step), capped so the double-buffered
    # output block stays in the low-MiB range even for big dim, and chosen so
    # the grid has >= 2 steps when possible (v7x megacore sharding).
    if bf <= 8:
        tb = bf                                   # single block == full array (allowed)
    else:
        vmem_rows = max(8, (8 * 1024 * 1024) // (2 * w * 4))
        tb = min(block_b, vmem_rows, pl.cdiv(bf, 2))
        tb = max(8, ((tb + 7) // 8) * 8)          # sublane multiple of 8
    grid = (pl.cdiv(bf, tb),)                     # ragged last block clipped by Pallas

    kernel = functools.partial(_pos_enc_kernel, dim=dim, count=count, fold=fold)
    out = pl.pallas_call(
        kernel,
        out_shape=jax.ShapeDtypeStruct((bf, w), out_dtype),
        grid=grid,
        in_specs=[pl.BlockSpec((tb, fold), lambda i: (i, 0))],
        out_specs=pl.BlockSpec((tb, w), lambda i: (i, 0)),
        compiler_params=pltpu.CompilerParams(
            dimension_semantics=("parallel",),
        ),
    )(nl)

    # Free row-major view back to (B, dim).
    return out.reshape(B, dim)


def _reference(noise_level, dim):
    count = dim // 2
    step = jnp.arange(count, dtype=jnp.float32) / count
    enc = noise_level.astype(jnp.float32)[:, None] * jnp.exp(-math.log(10000.0) * step[None, :])
    return jnp.concatenate([jnp.sin(enc), jnp.cos(enc)], axis=-1)


if __name__ == "__main__":
    dim = 64

    # 1) Primary small case (B=8): folded layout (fold=2), single grid step.
    noise_level = jax.random.uniform(jax.random.PRNGKey(0), (8,), dtype=jnp.float32)
    out = positional_encoding(noise_level, dim)
    jax.block_until_ready(out)
    assert out.shape == (8, dim)
    assert jnp.allclose(out, _reference(noise_level, dim), atol=1e-5, rtol=1e-5)

    # 2) Ragged grid, no folding (B=13 is odd): last output block is clipped.
    nl2 = jax.random.uniform(jax.random.PRNGKey(1), (13,), dtype=jnp.float32)
    out2 = positional_encoding(nl2, dim)
    jax.block_until_ready(out2)
    assert out2.shape == (13, dim)
    assert jnp.allclose(out2, _reference(nl2, dim), atol=1e-5, rtol=1e-5)

    # 3) Folded + multi-step grid + ragged last block (B=48 -> bf=24, tb=16).
    nl3 = jax.random.uniform(jax.random.PRNGKey(2), (48,), dtype=jnp.float32)
    out3 = positional_encoding(nl3, dim)
    jax.block_until_ready(out3)
    assert jnp.allclose(out3, _reference(nl3, dim), atol=1e-5, rtol=1e-5)

    # 4) dim >= 128 path (natively lane-dense, no folding), two grid steps.
    nl4 = jax.random.uniform(jax.random.PRNGKey(3), (32,), dtype=jnp.float32)
    out4 = positional_encoding(nl4, 256)
    jax.block_until_ready(out4)
    assert jnp.allclose(out4, _reference(nl4, 256), atol=1e-5, rtol=1e-5)

    print("KERNEL_OK")
</pallas_src>

<mosaic_0001>
module attributes {stable_mosaic.version = 11 : i64} {
  func.func @_pos_enc_kernel(%arg0: i32, %arg1: memref<4x2xf32, #tpu.memory_space<vmem>>, %arg2: memref<4x128xf32, #tpu.memory_space<vmem>>) attributes {dimension_semantics = [#tpu.dimension_semantics<parallel>], iteration_bounds = array<i64: 1>, scalar_prefetch = 0 : i64, scratch_operands = 0 : i64, tpu.core_type = #tpu.core_type<tc>, window_params = [{transform_indices = @transform_0, window_bounds = array<i64: 4, 2>}, {transform_indices = @transform_1, window_bounds = array<i64: 4, 128>}]} {
    %0 = tpu.iota {dimensions = array<i32: 1>} : vector<1x128xi32>
    %c64_i32 = arith.constant 64 : i32
    %c0_i32 = arith.constant 0 : i32
    %1 = arith.cmpi eq, %c64_i32, %c0_i32 : i32
    %c1_i32 = arith.constant 1 : i32
    %2 = arith.select %1, %c1_i32, %c64_i32 : i32
    %3 = vector.broadcast %2 : i32 to vector<1x128xi32>
    %4 = arith.remsi %0, %3 : vector<1x128xi32>
    %c0_i32_0 = arith.constant 0 : i32
    %5 = vector.broadcast %c0_i32_0 : i32 to vector<1x128xi32>
    %6 = arith.cmpi ne, %4, %5 : vector<1x128xi32>
    %c0_i32_1 = arith.constant 0 : i32
    %7 = vector.broadcast %c0_i32_1 : i32 to vector<1x128xi32>
    %8 = arith.cmpi slt, %4, %7 : vector<1x128xi32>
    %c0_i32_2 = arith.constant 0 : i32
    %9 = arith.cmpi slt, %2, %c0_i32_2 : i32
    %10 = vector.broadcast %9 : i1 to vector<1x128xi1>
    %11 = vector.broadcast %10 : vector<1x128xi1> to vector<1x128xi1>
    %12 = arith.xori %8, %11 : vector<1x128xi1>
    %13 = arith.andi %12, %6 : vector<1x128xi1>
    %14 = vector.broadcast %2 : i32 to vector<1x128xi32>
    %15 = arith.addi %4, %14 : vector<1x128xi32>
    %16 = arith.select %13, %15, %4 : vector<1x128xi1>, vector<1x128xi32>
    %c32_i32 = arith.constant 32 : i32
    %17 = vector.broadcast %c32_i32 : i32 to vector<1x128xi32>
    %18 = arith.cmpi slt, %16, %17 : vector<1x128xi32>
    %c32_i32_3 = arith.constant 32 : i32
    %19 = vector.broadcast %c32_i32_3 : i32 to vector<1x128xi32>
    %20 = arith.subi %16, %19 : vector<1x128xi32>
    %21 = arith.select %18, %16, %20 : vector<1x128xi1>, vector<1x128xi32>
    %22 = arith.sitofp %21 : vector<1x128xi32> to vector<1x128xf32>
    %cst = arith.constant -0.287823141 : f32
    %23 = vector.broadcast %cst : f32 to vector<1x128xf32>
    %24 = arith.mulf %22, %23 : vector<1x128xf32>
    %25 = math.exp %24 : vector<1x128xf32>
    %c32_i32_4 = arith.constant 32 : i32
    %26 = vector.broadcast %c32_i32_4 : i32 to vector<1x128xi32>
    %27 = arith.cmpi slt, %16, %26 : vector<1x128xi32>
    %cst_5 = arith.constant 0.000000e+00 : f32
    %cst_6 = arith.constant 1.57079637 : f32
    %28 = vector.broadcast %cst_5 : f32 to vector<1x128xf32>
    %29 = vector.broadcast %cst_6 : f32 to vector<1x128xf32>
    %30 = arith.select %27, %28, %29 : vector<1x128xi1>, vector<1x128xf32>
    %c0 = arith.constant 0 : index
    %c0_7 = arith.constant 0 : index
    %31 = vector.load %arg1[%c0, %c0_7] : memref<4x2xf32, #tpu.memory_space<vmem>>, vector<4x2xf32>
    %32 = vector.extract_strided_slice %31 {offsets = [0, 0], sizes = [4, 1], strides = [1, 1]} : vector<4x2xf32> to vector<4x1xf32>
    %33 = vector.shape_cast %32 : vector<4x1xf32> to vector<4x1xf32>
    %34 = vector.broadcast %33 : vector<4x1xf32> to vector<4x128xf32>
    %c64_i32_8 = arith.constant 64 : i32
    %35 = vector.broadcast %c64_i32_8 : i32 to vector<1x128xi32>
    %36 = arith.cmpi sge, %0, %35 : vector<1x128xi32>
    %37 = vector.extract_strided_slice %31 {offsets = [0, 1], sizes = [4, 1], strides = [1, 1]} : vector<4x2xf32> to vector<4x1xf32>
    %38 = vector.shape_cast %36 : vector<1x128xi1> to vector<1x128xi1>
    %39 = vector.broadcast %38 : vector<1x128xi1> to vector<4x128xi1>
    %40 = vector.shape_cast %37 : vector<4x1xf32> to vector<4x1xf32>
    %41 = vector.broadcast %40 : vector<4x1xf32> to vector<4x128xf32>
    %42 = arith.select %39, %41, %34 : vector<4x128xi1>, vector<4x128xf32>
    %43 = vector.broadcast %25 : vector<1x128xf32> to vector<4x128xf32>
    %44 = arith.mulf %42, %43 : vector<4x128xf32>
    %45 = vector.broadcast %30 : vector<1x128xf32> to vector<4x128xf32>
    %46 = arith.addf %44, %45 : vector<4x128xf32>
    %47 = math.sin %46 : vector<4x128xf32>
    %c0_9 = arith.constant 0 : index
    %c0_10 = arith.constant 0 : index
    %48 = vector.load %arg2[%c0_9, %c0_10] : memref<4x128xf32, #tpu.memory_space<vmem>>, vector<4x128xf32>
    tpu.vector_store %arg2[%c0_9, %c0_10], %47 {strides = array<i32>} : memref<4x128xf32, #tpu.memory_space<vmem>>, vector<4x128xf32>,
    return
  }
  func.func @transform_0(%arg0: i32) -> (i32, i32) {
    %c0_i32 = arith.constant 0 : i32
    %c0_i32_0 = arith.constant 0 : i32
    return %arg0, %c0_i32 : i32, i32
  }
  func.func @transform_1(%arg0: i32) -> (i32, i32) {
    %c0_i32 = arith.constant 0 : i32
    %c0_i32_0 = arith.constant 0 : i32
    return %arg0, %c0_i32 : i32, i32
  }
}

</mosaic_0001>

<bundles_post_ra>
// kernel: tpu_custom_call.1
= control target key start
LH: loop header
LB: loop body
LE: loop exit
PB: predicated region body
PF: predicated region fallthrough
CT: control target
= control target key end

     0   :  { %s273_s0 = inlined_call_operand.vmem [shape: f32[4,2], index: 0, kind: input, shape index: {}]   ;;  %s274_s1 = inlined_call_operand.hbm [shape: f32[4,128], index: 1, kind: output, shape index: {}]  }
   0x1   :  { %v31_v0 = vld [vmem:[%s273_s0] sm:$0xf] }
   0x2   :  { %6 = vsyncpa [#allocation3], 0  ;;  %v217_v1 = vmov 0   ;;  %v218_v2 = vmov 1   ;;  %v9_v3 = vlaneseq  ;;  %v219_v14 = vmov 1.5707964  }
   0x3   :  { %185 = vset.pattern.permute.xlu0 %v217_v1  ;;  %v220_v29 = vmov 683565275   ;;  %v221_v31 = vmov 2475754826   ;;  %v222_v34 = vmov 2131351028  }
   0x4   :  { %34 = vperm.xlu0 %185, %v31_v0   ;;  %v10_v4 = vand.u32 127, %v9_v3  ;;  %v223_v37 = vmov 2102212464   ;;  %v224_v40 = vmov 920167782   ;;  %s226_s0 = smov [#allocation2]  }
   0x5   :  { %v225_v43 = vmov 1326507024   ;;  %s158_s8 = sshll.u32 %s226_s0, 4  ;;  %s159_s8 = int_to_ptr.vmem [resolvable:$true] %s158_s8 }
   0x6   :  { %v15_v5 = vand.u32 63, %v10_v4  ;;  %vm37_vm1 = vcmp.ge.s32.totalorder %v10_v4, 64  ;;  %s193_s9 = scalar_lea.vmem %s159_s8, 64  ;;  %p198_p1 = scmp.lt.s32.totalorder %s159_s8, %s159_s8 }
   0x7   :  { %p194_p0 = scmp.ne.s32.totalorder %s159_s8, %s193_s9  ;;  %p199_p2 = scmp.lt.s32.totalorder %s193_s9, %s193_s9 }
   0x8   :  { %186 = vset.pattern.permute.xlu0 %v218_v2  ;;  %v166_v6 = vadd.s32 4294967264, %v15_v5  ;;  %vm23_vm0 = vcmp.lt.s32.totalorder %v15_v5, 32 }
   0x9   :  { %41 = vperm.xlu0 %186, %v31_v0   ;;  %v30_v15 = vsel %vm23_vm0, 0.0, %v219_v14  ;;  %p200_p3 = por %p199_p2, %p198_p1 }
   0xa   :  { %v25_v7 = vsel %vm23_vm0, %v15_v5, %v166_v6 }
   0xb   :  { %v26_v8 = vcvt.s32.f32 %v25_v7  ;;  %p201_p4 = pnand %p200_p3, %p194_p0 }
   0xd   :  { %v27_v9 = vmul.f32 -0.28782314, %v26_v8 }
   0xf   :  { %v28_v10 = vmul.f32 1.442695, %v27_v9 }
  0x11   :  { %187 = vpow2.f32 %v28_v10 }
  0x1b   :  { %v188_v12 = vpop.eup %187 }
  0x83   :  { %v35_v11 = vpop.permute.xlu0 %34 }
  0x88   :  { %v42_v13 = vpop.permute.xlu0 %41 }
  0x89   :  { %v44_v16 = vsel %vm37_vm1, %v42_v13, %v35_v11 }
  0x8a   :  { %v45_v17 = vmul.f32 %v188_v12, %v44_v16 }
  0x8c   :  { %v240_v18 = vadd.f32 %v45_v17, %v30_v15 }
  0x8e   :  { %v50_v19 = vand.u32 2139095040, %v240_v18  ;;  %v47_v23 = vand.u32 2147483647, %v240_v18  ;;  %vm49_vm9 = vcmp.lt.s32.totalorder %v240_v18, 0  ;;  %vm139_vm14 = vweird.f32 %v240_v18 }
  0x90   :  { %v51_v20 = vshrl.u32 %v50_v19, 23  ;;  %v54_v27 = vand.u32 8388607, %v47_v23  ;;  %vm48_vm10 = vcmp.le.f32.partialorder %v47_v23, 0.7853982 }
  0x92   :  { %v167_v21 = vadd.s32 4294967169, %v51_v20  ;;  %v55_v45 = vor.u32 8388608, %v54_v27 }
  0x94   :  { %v57_v22 = vadd.s32 1, %v167_v21  ;;  %v95_v59 = vshll.u32 %v55_v45, 8 }
  0x96   :  { %vm58_vm2 = vcmp.gt.s32.totalorder %v57_v22, 0 }
  0x97   :  { %v59_v24 = vsel %vm58_vm2, %v57_v22, 0 }
  0x98   :  { %v61_v25 = vand.u32 31, %v59_v24  ;;  %v60_v28 = vshrl.u32 %v59_v24, 5 }
  0x9a   :  { %v62_v26 = vsub.s32 32, %v61_v25  ;;  %v64_v30 = vshll.u32 %v220_v29, %v61_v25  ;;  %v67_v32 = vshll.u32 %v221_v31, %v61_v25  ;;  %v70_v36 = vshll.u32 %v222_v34, %v61_v25 }
  0x9b   :  { %v73_v39 = vshll.u32 %v223_v37, %v61_v25  ;;  %v76_v42 = vshll.u32 %v224_v40, %v61_v25  ;;  %vm79_vm3 = vcmp.lt.s32.totalorder %v60_v28, 1  ;;  %vm82_vm4 = vcmp.lt.s32.totalorder %v60_v28, 4 }
  0x9c   :  { %v65_v33 = vshrl.u32 %v221_v31, %v62_v26  ;;  %v68_v35 = vshrl.u32 %v222_v34, %v62_v26  ;;  %v71_v38 = vshrl.u32 %v223_v37, %v62_v26  ;;  %v74_v41 = vshrl.u32 %v224_v40, %v62_v26 }
  0x9d   :  { %v77_v44 = vshrl.u32 %v225_v43, %v62_v26  ;;  %v63_v54 = vshrl.u32 %v220_v29, %v62_v26  ;;  %vm81_vm5 = vcmp.lt.s32.totalorder %v60_v28, 3  ;;  %vm80_vm6 = vcmp.lt.s32.totalorder %v60_v28, 2 }
  0x9e   :  { %v66_v46 = vor.u32 %v65_v33, %v64_v30  ;;  %v69_v47 = vor.u32 %v68_v35, %v67_v32  ;;  %v72_v48 = vor.u32 %v71_v38, %v70_v36  ;;  %v75_v49 = vor.u32 %v74_v41, %v73_v39 }
  0x9f   :  { %v78_v50 = vor.u32 %v77_v44, %v76_v42 }
  0xa0   :  { %v84_v51 = vsel %vm82_vm4, %v72_v48, 2102212464  ;;  %v87_v52 = vsel %vm79_vm3, %v66_v46, %v69_v47  ;;  %v91_v53 = vsel %vm79_vm3, %v69_v47, %v72_v48  ;;  %v88_v55 = vsel %vm82_vm4, %v75_v49, 920167782 }
  0xa1   :  { %v92_v56 = vsel %vm82_vm4, %v78_v50, 1326507024  ;;  %v89_v57 = vsel %vm81_vm5, %v72_v48, %v88_v55  ;;  %v83_v60 = vsel %vm79_vm3, %v63_v54, %v66_v46  ;;  %v85_v61 = vsel %vm81_vm5, %v69_v47, %v84_v51 }
  0xa2   :  { %v93_v58 = vsel %vm81_vm5, %v75_v49, %v92_v56  ;;  %v90_v62 = vsel %vm80_vm6, %v87_v52, %v89_v57  ;;  %v86_v4 = vsel %vm80_vm6, %v83_v60, %v85_v61 }
  0xa3   :  { %v94_v63 = vsel %vm80_vm6, %v91_v53, %v93_v58  ;;  %v249_v2 = vmul.u32.u64.low %v95_v59, %v90_v62  ;;  %v250_v3 = vmul.u32.u64.high %v95_v59, %v90_v62, %v249_v2  ;;  %v102_v6 = vmul.u32 %v95_v59, %v86_v4 }
  0xa4   :  { %v246_v0 = vmul.u32.u64.low %v95_v59, %v94_v63  ;;  %v247_v1 = vmul.u32.u64.high %v95_v59, %v94_v63, %v246_v0 }
  0xa5   :  { %v105_v5 = vadd.s32 1, %v250_v3 }
  0xa6   :  { %vm104_vm7 = vc.u32 %v247_v1, %v249_v2  ;;  %v103_v19 = vadd.s32 %v249_v2, %v247_v1 }
  0xa7   :  { %v106_v7 = vsel %vm104_vm7, %v105_v5, %v250_v3 }
  0xa8   :  { %v107_v8 = vadd.s32 %v106_v7, %v102_v6 }
  0xaa   :  { %v108_v9 = vadd.s32 536870912, %v107_v8 }
  0xac   :  { %v109_v10 = vshrl.u32 %v108_v9, 30 }
  0xae   :  { %v110_v11 = vshll.u32 %v109_v10, 30  ;;  %v133_v32 = vsub.s32 4, %v109_v10 }
  0xb0   :  { %v111_v12 = vsub.s32 %v107_v8, %v110_v11  ;;  %v134_v35 = vsel %vm49_vm9, %v133_v32, %v109_v10 }
  0xb1   :  { %v136_v37 = vsel %vm48_vm10, 0, %v134_v35 }
  0xb2   :  { %v113_v13 = vsub.s32 0, %v111_v12  ;;  %v140_v38 = vadd.s32 3, %v136_v37 }
  0xb4   :  { %v168_v14 = vmin.u32 %v113_v13, %v111_v12  ;;  %v141_v39 = vand.u32 3, %v140_v38 }
  0xb6   :  { %v115_v15 = vclz %v168_v14  ;;  %vm146_vm11 = vcmp.eq.s32.totalorder %v141_v39, 2  ;;  %vm143_vm12 = vcmp.eq.s32.totalorder %v141_v39, 0  ;;  %vm142_vm13 = vcmp.lt.s32.totalorder %v141_v39, 2 }
  0xb8   :  { %v169_v16 = vadd.s32 4294967294, %v115_v15 }
  0xba   :  { %vm170_vm8 = vcmp.lt.s32.totalorder %v169_v16, 0 }
  0xbb   :  { %v118_v17 = vsel %vm170_vm8, 0, %v169_v16 }
  0xbc   :  { %v119_v20 = vsub.s32 32, %v118_v17  ;;  %v123_v21 = vsub.s32 4294967266, %v118_v17  ;;  %v120_v22 = vshll.u32 %v111_v12, %v118_v17 }
  0xbe   :  { %v121_v24 = vshrl.u32 %v103_v19, %v119_v20  ;;  %v124_v25 = vadd.s32 127, %v123_v21 }
  0xc0   :  { %v122_v26 = vor.u32 %v121_v24, %v120_v22  ;;  %v125_v27 = vshll.u32 %v124_v25, 23 }
  0xc2   :  { %v126_v28 = vor.u32 4788187, %v125_v27  ;;  %v129_v30 = vcvt.s32.f32 %v122_v26 }
  0xc4   :  { %v127_v29 = vand.u32 2147483647, %v126_v28 }
  0xc6   :  { %v130_v31 = vmul.f32 %v129_v30, %v127_v29 }
  0xc8   :  { %v131_v33 = vxor.u32 2147483648, %v130_v31 }
  0xca   :  { %v132_v34 = vsel %vm49_vm9, %v131_v33, %v130_v31 }
  0xcb   :  { %v135_v36 = vsel %vm48_vm10, %v240_v18, %v132_v34 }
  0xcc   :  { %189 = vcosq.f32 %v135_v36 }
  0xcd   :  { %191 = vsinq.f32 %v135_v36 }
  0xd6   :  { %v190_v40 = vpop.eup %189 }
  0xd7   :  { %v192_v41 = vpop.eup %191  ;;  %v147_v42 = vxor.u32 2147483648, %v190_v40 }
  0xd8   :  { %v144_v43 = vxor.u32 2147483648, %v192_v41 }
  0xd9   :  { %v148_v44 = vsel %vm146_vm11, %v147_v42, %v192_v41 }
  0xda   :  { %v145_v23 = vsel %vm143_vm12, %v190_v40, %v144_v43 }
  0xdb   :  { %v149_v45 = vsel %vm142_vm13, %v145_v23, %v148_v44 }
  0xdc   :  { %v150_v46 = vsel %vm139_vm14, nan, %v149_v45 }
  0xdd   :  { %151 = vst [vmem:[#allocation2] sm:$0xf] %v150_v46 }
  0xde   :  { %204 = shalt.err (!%p201_p4)
}
  0xdf   :  { %s205_s12 = scalar_lea.hbm %s274_s1, 64 }
  0xe0   :  { %p206_p5 = scmp.ne.s32.totalorder %s274_s1, %s205_s12  ;;  %p209_p6 = scmp.lt.u32.totalorder %s205_s12, %s274_s1 }
  0xe2   :  { %p211_p7 = pnand %p209_p6, %p206_p5 }
  0xe4   :  { %214 = shalt.err (!%p211_p7)
}
  0xe5   :  { %161 = dma.vmem_to_hbm [thread:$0]  %s159_s8, 64, %s274_s1, [#allocation3]  }
  0xe6   :  { %215 = dma.done.wait [#allocation3], 64  }
  0xe7   :  { %216 = vsyncadd [#allocation3], 4294967232 }
  0xe8   :  { %165 = vsyncpa [#allocation3], 1 }

</bundles_post_ra>
